<compile_context>
chip_gen: v6e
topology: v6e:2x2x1
jax: 0.10.0
libtpu: 0.0.40
codegen_flags: <defaults>
</compile_context>

<pallas_src>
import functools

import jax
import jax.numpy as jnp
from jax.experimental import pallas as pl
from jax.experimental.pallas import tpu as pltpu


def _feature_attn_kernel(x_ref, wcat_ref, blin_ref, a_ref, bias_ref, out_ref,
                         *, alpha, bc, n_inner):
    """One grid block = `n_inner * bc` batches, processed in chunks of `bc`."""
    W = x_ref.shape[1]
    two_e = wcat_ref.shape[-1]
    E = two_e // 2

    # ---- constants: loaded / broadcast ONCE per grid block (hoisted) -------
    wcat = wcat_ref[...]                                       # (W, 2E)
    wcat_b = jnp.broadcast_to(wcat[None], (bc, W, two_e))      # batched weight
    blin = blin_ref[...][None]                                 # (1, 1, E)
    avec = a_ref[...][None, None]                              # (1, 1, 1, E)
    bias = bias_ref[...][None]                                 # (1, K, K)

    def chunk(c, carry):
        start = pl.multiple_of(c * bc, bc)
        xc = x_ref[pl.ds(start, bc)]                           # (bc, W, K), natural layout

        # Fused GATv2 linear for both concat halves, batched over the chunk:
        #   lcat[b] = x[b]^T @ [W1^T | W2^T]        ('bwk,bwf->bkf', TN batched)
        # The W-axis contraction absorbs the (B,K,W) permute of the PyTorch
        # forward, so x never needs an explicit transpose.
        lcat = jax.lax.dot_general(
            xc, wcat_b,
            dimension_numbers=(((1,), (1,)), ((0,), (0,))),
            preferred_element_type=jnp.float32)                # (bc, K, 2E)
        li = lcat[..., :E]                                     # acts on node i (repeating)
        lj = lcat[..., E:] + blin                              # acts on node j, + lin bias

        # a_input[b,i,j,:] = lin(concat(x_i, x_j)) = li[b,i] + lj[b,j]
        s = li[:, :, None, :] + lj[:, None, :, :]              # (bc, K, K, E)
        s = jnp.where(s > 0, s, alpha * s)                     # LeakyReLU
        e = jnp.sum(s * avec, axis=-1) + bias                  # (bc, K, K)

        # softmax over j (last axis), numerically stabilized
        m = jnp.max(e, axis=-1, keepdims=True)
        p = jnp.exp(e - m)
        attn = p * pl.reciprocal(jnp.sum(p, axis=-1, keepdims=True),
                                 approx=False)                 # (bc, K, K)

        # dropout: identity (eval mode)

        # out[b,w,i] = sum_j x[b,w,j] * attn[b,i,j]   ('bwj,bij->bwi', NT batched)
        # -> lands directly in the (W, K) output layout, no host-side permute.
        h = jax.lax.dot_general(
            xc, attn,
            dimension_numbers=(((2,), (2,)), ((0,), (0,))),
            preferred_element_type=jnp.float32)                # (bc, W, K)
        out_ref[pl.ds(start, bc)] = jax.nn.sigmoid(h).astype(out_ref.dtype)
        return carry

    if n_inner == 1:
        chunk(0, 0)
    else:
        jax.lax.fori_loop(0, n_inner, chunk, 0, unroll=min(4, n_inner))


def _tensorcores_per_device():
    """Best-effort TC-per-device count so the 'parallel' grid axis only gets
    split when there is a second TensorCore to shard onto."""
    try:
        kind = jax.devices()[0].device_kind.lower()
    except Exception:
        return 1
    if any(tag in kind for tag in ("v7", "v4", "v5p", "v5 p")):
        return 2   # dual-TensorCore chips
    return 1       # v5e / v6e / unknown: single TC, one block covers everything


def _pick_batch_tiling(B, n_cores, *, inner_chunk=8, max_bt=2048):
    """Returns (bt, bc, n_blocks, b_pad): batch tile per grid block, in-kernel
    chunk size, number of grid blocks, and padded batch size."""
    n_blocks = n_cores if B >= n_cores else 1
    bt = pl.cdiv(B, n_blocks)
    bc = min(inner_chunk, bt)
    bt = bc * pl.cdiv(bt, bc)              # round tile up to a multiple of bc
    if bt > max_bt:                        # VMEM cap (x + out double-buffered)
        bt = max_bt
        bc = inner_chunk
        n_blocks = pl.cdiv(B, bt)
    return bt, bc, n_blocks, n_blocks * bt


def feature_attention_forward(x, lin_w, lin_b, a, bias, *, alpha):
    """x: (B, W, K) float32. Returns (B, W, K) float32."""
    B, W, K = x.shape
    E = lin_w.shape[0]                     # embed_dim = 2 * window_size (GATv2)
    assert lin_w.shape == (E, 2 * W)
    assert a.shape == (E, 1)
    assert bias.shape == (K, K)

    x = x.astype(jnp.float32)

    # One-time host-side parameter repacking — tiny, done once.
    w1t = jnp.transpose(lin_w[:, :W])                              # (W, E)
    w2t = jnp.transpose(lin_w[:, W:])                              # (W, E)
    wcat = jnp.concatenate([w1t, w2t], axis=1).astype(jnp.float32)  # (W, 2E)
    blin = lin_b.reshape(1, E).astype(jnp.float32)
    a2d = a.reshape(1, E).astype(jnp.float32)
    bias = bias.astype(jnp.float32)

    n_cores = _tensorcores_per_device()
    bt, bc, n_blocks, b_pad = _pick_batch_tiling(B, n_cores)
    if b_pad != B:
        # Zero-padded batches flow through harmlessly and are sliced off below.
        x = jnp.pad(x, ((0, b_pad - B), (0, 0), (0, 0)))

    kernel = functools.partial(_feature_attn_kernel, alpha=float(alpha),
                               bc=bc, n_inner=bt // bc)

    out = pl.pallas_call(
        kernel,
        out_shape=jax.ShapeDtypeStruct((b_pad, W, K), jnp.float32),
        grid_spec=pltpu.PrefetchScalarGridSpec(
            num_scalar_prefetch=0,
            grid=(n_blocks,),
            in_specs=[
                pl.BlockSpec((bt, W, K), lambda i: (i, 0, 0)),    # x batch tile
                # Constant-index blocks: fetched once, never re-DMA'd.
                pl.BlockSpec((W, 2 * E), lambda i: (0, 0)),       # fused [W1^T|W2^T]
                pl.BlockSpec((1, E), lambda i: (0, 0)),           # lin bias
                pl.BlockSpec((1, E), lambda i: (0, 0)),           # attention vector a
                pl.BlockSpec((K, K), lambda i: (0, 0)),           # pairwise bias
            ],
            out_specs=pl.BlockSpec((bt, W, K), lambda i: (i, 0, 0)),
        ),
        compiler_params=pltpu.CompilerParams(
            dimension_semantics=("parallel",)),
    )(x, wcat, blin, a2d, bias)

    return out[:B] if b_pad != B else out


def _reference_forward(x, lin_w, lin_b, a, bias, *, alpha):
    """Pure-JAX reproduction of the PyTorch forward (eval mode), for checking."""
    xk = jnp.transpose(x, (0, 2, 1))                 # (B, K, W)
    B, K, W = xk.shape
    xi = jnp.broadcast_to(xk[:, :, None, :], (B, K, K, W))
    xj = jnp.broadcast_to(xk[:, None, :, :], (B, K, K, W))
    a_input = jnp.concatenate([xi, xj], axis=-1)     # (B, K, K, 2W)
    lin_out = a_input @ lin_w.T + lin_b              # (B, K, K, E)
    lin_out = jnp.where(lin_out > 0, lin_out, alpha * lin_out)
    e = (lin_out @ a)[..., 0]                        # (B, K, K)
    e = e + bias
    attn = jax.nn.softmax(e, axis=2)
    h = jax.nn.sigmoid(attn @ xk)                    # (B, K, W)
    return jnp.transpose(h, (0, 2, 1))


if __name__ == "__main__":
    # Module hyperparameters
    n_features = 8      # K
    window_size = 16    # W
    alpha = 0.2
    embed_dim = 2 * window_size   # GATv2: embed_dim (= window_size) * 2
    batch = 2

    key = jax.random.PRNGKey(0)
    kx, kw, kb, ka, kbias, kx2 = jax.random.split(key, 6)

    # Deterministic synthetic parameter init (shapes from __init__)
    lin_w = jax.random.uniform(kw, (embed_dim, 2 * window_size),
                               minval=-0.2, maxval=0.2, dtype=jnp.float32)
    lin_b = jax.random.uniform(kb, (embed_dim,),
                               minval=-0.2, maxval=0.2, dtype=jnp.float32)
    # xavier_uniform(gain=1.414) on (embed_dim, 1)
    xav = 1.414 * (6.0 / (embed_dim + 1)) ** 0.5
    a_param = jax.random.uniform(ka, (embed_dim, 1),
                                 minval=-xav, maxval=xav, dtype=jnp.float32)
    bias_param = jax.random.normal(kbias, (n_features, n_features),
                                   dtype=jnp.float32) * 0.1

    # Input: (B, window_size, n_features)
    x = jax.random.normal(kx, (batch, window_size, n_features), dtype=jnp.float32)

    out = feature_attention_forward(x, lin_w, lin_b, a_param, bias_param,
                                    alpha=alpha)
    out = jax.block_until_ready(out)
    ref = jax.block_until_ready(
        _reference_forward(x, lin_w, lin_b, a_param, bias_param, alpha=alpha))
    assert out.shape == (batch, window_size, n_features)
    assert jnp.allclose(out, ref, rtol=1e-5, atol=1e-5)

    # Second check: odd batch size exercises the padding + chunked-loop path.
    batch2 = 13
    x2 = jax.random.normal(kx2, (batch2, window_size, n_features),
                           dtype=jnp.float32)
    out2 = jax.block_until_ready(
        feature_attention_forward(x2, lin_w, lin_b, a_param, bias_param,
                                  alpha=alpha))
    ref2 = jax.block_until_ready(
        _reference_forward(x2, lin_w, lin_b, a_param, bias_param, alpha=alpha))
    assert out2.shape == (batch2, window_size, n_features)
    assert jnp.allclose(out2, ref2, rtol=1e-5, atol=1e-5)

    print("KERNEL_OK")
</pallas_src>

<mosaic_0001>
module attributes {stable_mosaic.version = 11 : i64} {
  func.func @_feature_attn_kernel(%arg0: i32, %arg1: memref<2x16x8xf32, #tpu.memory_space<vmem>>, %arg2: memref<16x64xf32, #tpu.memory_space<vmem>>, %arg3: memref<1x32xf32, #tpu.memory_space<vmem>>, %arg4: memref<1x32xf32, #tpu.memory_space<vmem>>, %arg5: memref<8x8xf32, #tpu.memory_space<vmem>>, %arg6: memref<2x16x8xf32, #tpu.memory_space<vmem>>) attributes {dimension_semantics = [#tpu.dimension_semantics<parallel>], iteration_bounds = array<i64: 1>, scalar_prefetch = 0 : i64, scratch_operands = 0 : i64, tpu.core_type = #tpu.core_type<tc>, window_params = [{transform_indices = @transform_0, window_bounds = array<i64: 2, 16, 8>}, {pipeline_mode = #tpu.pipeline_mode<synchronous>, transform_indices = @transform_1, window_bounds = array<i64: 16, 64>}, {pipeline_mode = #tpu.pipeline_mode<synchronous>, transform_indices = @transform_2, window_bounds = array<i64: 1, 32>}, {pipeline_mode = #tpu.pipeline_mode<synchronous>, transform_indices = @transform_3, window_bounds = array<i64: 1, 32>}, {pipeline_mode = #tpu.pipeline_mode<synchronous>, transform_indices = @transform_4, window_bounds = array<i64: 8, 8>}, {transform_indices = @transform_5, window_bounds = array<i64: 2, 16, 8>}]} {
    %c0 = arith.constant 0 : index
    %c0_0 = arith.constant 0 : index
    %0 = vector.load %arg2[%c0, %c0_0] : memref<16x64xf32, #tpu.memory_space<vmem>>, vector<16x64xf32>
    %1 = vector.shape_cast %0 : vector<16x64xf32> to vector<1x16x64xf32>
    %2 = vector.shape_cast %1 : vector<1x16x64xf32> to vector<1x16x64xf32>
    %3 = vector.broadcast %2 : vector<1x16x64xf32> to vector<2x16x64xf32>
    %c0_1 = arith.constant 0 : index
    %c0_2 = arith.constant 0 : index
    %4 = vector.load %arg3[%c0_1, %c0_2] : memref<1x32xf32, #tpu.memory_space<vmem>>, vector<1x32xf32>
    %5 = vector.shape_cast %4 : vector<1x32xf32> to vector<1x1x32xf32>
    %c0_3 = arith.constant 0 : index
    %c0_4 = arith.constant 0 : index
    %6 = vector.load %arg4[%c0_3, %c0_4] : memref<1x32xf32, #tpu.memory_space<vmem>>, vector<1x32xf32>
    %7 = vector.shape_cast %6 : vector<1x32xf32> to vector<1x1x1x32xf32>
    %c0_5 = arith.constant 0 : index
    %c0_6 = arith.constant 0 : index
    %8 = vector.load %arg5[%c0_5, %c0_6] : memref<8x8xf32, #tpu.memory_space<vmem>>, vector<8x8xf32>
    %9 = vector.shape_cast %8 : vector<8x8xf32> to vector<1x8x8xf32>
    %c0_i32 = arith.constant 0 : i32
    %10 = tpu.assume_multiple %c0_i32, 2 : i32
    %11 = arith.index_cast %10 : i32 to index
    %c0_7 = arith.constant 0 : index
    %c0_8 = arith.constant 0 : index
    %12 = vector.load %arg1[%11, %c0_7, %c0_8] : memref<2x16x8xf32, #tpu.memory_space<vmem>>, vector<2x16x8xf32>
    %cst = arith.constant dense<0.000000e+00> : vector<2x8x64xf32>
    %13 = tpu.matmul %12, %3, %cst {dimension_numbers = #tpu.dot_dimension_numbers<[1], [1], [2], [2], [0, 0, 0, 2, 1, 2], [0], [0]>} : vector<2x16x8xf32>, vector<2x16x64xf32>, vector<2x8x64xf32> -> vector<2x8x64xf32>
    %14 = vector.extract_strided_slice %13 {offsets = [0, 0, 0], sizes = [2, 8, 32], strides = [1, 1, 1]} : vector<2x8x64xf32> to vector<2x8x32xf32>
    %15 = vector.extract_strided_slice %13 {offsets = [0, 0, 32], sizes = [2, 8, 32], strides = [1, 1, 1]} : vector<2x8x64xf32> to vector<2x8x32xf32>
    %16 = vector.broadcast %5 : vector<1x1x32xf32> to vector<2x8x32xf32>
    %17 = arith.addf %15, %16 : vector<2x8x32xf32>
    %18 = vector.shape_cast %14 : vector<2x8x32xf32> to vector<2x8x1x32xf32>
    %19 = vector.shape_cast %17 : vector<2x8x32xf32> to vector<2x1x8x32xf32>
    %20 = vector.broadcast %18 : vector<2x8x1x32xf32> to vector<2x8x8x32xf32>
    %21 = vector.broadcast %19 : vector<2x1x8x32xf32> to vector<2x8x8x32xf32>
    %22 = arith.addf %20, %21 : vector<2x8x8x32xf32>
    %cst_9 = arith.constant 0.000000e+00 : f32
    %23 = vector.broadcast %cst_9 : f32 to vector<2x8x8x32xf32>
    %24 = arith.cmpf ogt, %22, %23 : vector<2x8x8x32xf32>
    %cst_10 = arith.constant 2.000000e-01 : f32
    %25 = vector.broadcast %cst_10 : f32 to vector<2x8x8x32xf32>
    %26 = arith.mulf %25, %22 : vector<2x8x8x32xf32>
    %27 = arith.select %24, %22, %26 : vector<2x8x8x32xi1>, vector<2x8x8x32xf32>
    %28 = vector.broadcast %7 : vector<1x1x1x32xf32> to vector<2x8x8x32xf32>
    %29 = arith.mulf %27, %28 : vector<2x8x8x32xf32>
    %cst_11 = arith.constant dense<0.000000e+00> : vector<2x8x8xf32>
    %30 = vector.multi_reduction <add>, %29, %cst_11 [3] : vector<2x8x8x32xf32> to vector<2x8x8xf32>
    %31 = vector.broadcast %9 : vector<1x8x8xf32> to vector<2x8x8xf32>
    %32 = arith.addf %30, %31 : vector<2x8x8xf32>
    %cst_12 = arith.constant dense<0xFF800000> : vector<2x8xf32>
    %33 = vector.multi_reduction <maximumf>, %32, %cst_12 [2] : vector<2x8x8xf32> to vector<2x8xf32>
    %34 = vector.shape_cast %33 : vector<2x8xf32> to vector<2x8x1xf32>
    %35 = vector.broadcast %34 : vector<2x8x1xf32> to vector<2x8x8xf32>
    %36 = arith.subf %32, %35 : vector<2x8x8xf32>
    %37 = math.exp %36 : vector<2x8x8xf32>
    %cst_13 = arith.constant dense<0.000000e+00> : vector<2x8xf32>
    %38 = vector.multi_reduction <add>, %37, %cst_13 [2] : vector<2x8x8xf32> to vector<2x8xf32>
    %39 = vector.shape_cast %38 : vector<2x8xf32> to vector<2x8x1xf32>
    %40 = tpu.reciprocal %39 : vector<2x8x1xf32> -> vector<2x8x1xf32>
    %41 = vector.broadcast %40 : vector<2x8x1xf32> to vector<2x8x8xf32>
    %42 = arith.mulf %37, %41 : vector<2x8x8xf32>
    %cst_14 = arith.constant dense<0.000000e+00> : vector<2x16x8xf32>
    %43 = tpu.matmul %12, %42, %cst_14 {dimension_numbers = #tpu.dot_dimension_numbers<[2], [2], [1], [1], [0, 0, 0, 1, 1, 1], [0], [0]>} : vector<2x16x8xf32>, vector<2x8x8xf32>, vector<2x16x8xf32> -> vector<2x16x8xf32>
    %44 = arith.negf %43 : vector<2x16x8xf32>
    %45 = math.exp %44 : vector<2x16x8xf32>
    %cst_15 = arith.constant 1.000000e+00 : f32
    %46 = vector.broadcast %cst_15 : f32 to vector<2x16x8xf32>
    %47 = arith.addf %46, %45 : vector<2x16x8xf32>
    %48 = arith.divf %46, %47 : vector<2x16x8xf32>
    %49 = arith.index_cast %10 : i32 to index
    %c0_16 = arith.constant 0 : index
    %c0_17 = arith.constant 0 : index
    %50 = vector.load %arg6[%49, %c0_16, %c0_17] : memref<2x16x8xf32, #tpu.memory_space<vmem>>, vector<2x16x8xf32>
    tpu.vector_store %arg6[%49, %c0_16, %c0_17], %48 {strides = array<i32>} : memref<2x16x8xf32, #tpu.memory_space<vmem>>, vector<2x16x8xf32>,
    return
  }
  func.func @transform_0(%arg0: i32) -> (i32, i32, i32) {
    %c0_i32 = arith.constant 0 : i32
    %c0_i32_0 = arith.constant 0 : i32
    %c0_i32_1 = arith.constant 0 : i32
    return %arg0, %c0_i32, %c0_i32_0 : i32, i32, i32
  }
  func.func @transform_1(%arg0: i32) -> (i32, i32) {
    %c0_i32 = arith.constant 0 : i32
    %c0_i32_0 = arith.constant 0 : i32
    %c0_i32_1 = arith.constant 0 : i32
    return %c0_i32, %c0_i32_0 : i32, i32
  }
  func.func @transform_2(%arg0: i32) -> (i32, i32) {
    %c0_i32 = arith.constant 0 : i32
    %c0_i32_0 = arith.constant 0 : i32
    %c0_i32_1 = arith.constant 0 : i32
    return %c0_i32, %c0_i32_0 : i32, i32
  }
  func.func @transform_3(%arg0: i32) -> (i32, i32) {
    %c0_i32 = arith.constant 0 : i32
    %c0_i32_0 = arith.constant 0 : i32
    %c0_i32_1 = arith.constant 0 : i32
    return %c0_i32, %c0_i32_0 : i32, i32
  }
  func.func @transform_4(%arg0: i32) -> (i32, i32) {
    %c0_i32 = arith.constant 0 : i32
    %c0_i32_0 = arith.constant 0 : i32
    %c0_i32_1 = arith.constant 0 : i32
    return %c0_i32, %c0_i32_0 : i32, i32
  }
  func.func @transform_5(%arg0: i32) -> (i32, i32, i32) {
    %c0_i32 = arith.constant 0 : i32
    %c0_i32_0 = arith.constant 0 : i32
    %c0_i32_1 = arith.constant 0 : i32
    return %arg0, %c0_i32, %c0_i32_0 : i32, i32, i32
  }
}

</mosaic_0001>

<bundles_post_ra>
// kernel: tpu_custom_call.1
= control target key start
LH: loop header
LB: loop body
LE: loop exit
PB: predicated region body
PF: predicated region fallthrough
CT: control target
= control target key end

     0   :  { %v1649_v2 = vmov 0.0   ;;  %vm1650_vm0 = vmmov 0   ;;  %v258_v7 = vlaneseq  ;;  %s1651_s7 = smov 32   ;;  %vm63_vm1 = vcmask 130048   ;;  %s2194_s0 = inlined_call_operand.vmem [shape: f32[2,16,8], index: 0, kind: input, shape index: {}]   ;;  %s2195_s1 = inlined_call_operand.vmem [shape: f32[16,64], index: 1, kind: input, shape index: {}]   ;;  %s2196_s4 = inlined_call_operand.vmem [shape: f32[8,8], index: 4, kind: input, shape index: {}]   ;;  %s2197_s2 = inlined_call_operand.vmem [shape: f32[1,32], index: 2, kind: input, shape index: {}]   ;;  %s2198_s3 = inlined_call_operand.vmem [shape: f32[1,32], index: 3, kind: input, shape index: {}]   ;;  %s2199_s5 = inlined_call_operand.vmem [shape: f32[2,16,8], index: 5, kind: output, shape index: {}]  }
   0x1   :  { %v1688_v0 = vld [vmem:[%s2194_s0 + $0x10] sm:$0xff]  ;;  %v1693_v1 = vld [vmem:[%s2194_s0] sm:$0xff]  ;;  %1563 = vmatprep.subr.mxu0 %v1649_v2  ;;  %1570 = vmatprep.subr.mxu1 %v1649_v2  ;;  %v21_v3 = vld [vmem:[%s2195_s1 + $0x8] sm:$0xff]  ;;  %v1653_v32 = vmov 1966171168   ;;  %vm526_vm2 = vcmask 261120  }
   0x2   :  { %137 = vxpose.xlu1.b32.start [1/2] (short) (narrow) %v1688_v0, 8  ;;  %31 = vxpose.xlu0.b32.start [1/2] (short) (narrow) %v1693_v1, 8  ;;  %v20_v4 = vld [vmem:[%s2195_s1] sm:$0xff]  ;;  %v30_v5 = vld [vmem:[%s2194_s0 + $0x18] sm:$0xff]  ;;  %v28_v6 = vld [vmem:[%s2194_s0 + $0x8] sm:$0xff]  ;;  %v1710_v8 = vshrl.u32 %v258_v7, 7  ;;  %v256_v33 = vunpack.c.l.s4 %v1653_v32 }
   0x3   :  { %1564 = vmatpush3.msra.mxu0 %v21_v3  ;;  %1571 = vmatpush3.msra.mxu1 %v21_v3  ;;  %v1718_v10 = vld [vmem:[%s2196_s4] sm:$0xff] }
   0x4   :  { %1565 = vmatprep.subr.mxu0 %v1649_v2  ;;  %1572 = vmatprep.subr.mxu1 %v1649_v2  ;;  %v1713_v9 = vsub.s32 0, %v1710_v8  ;;  %v1723_v12 = vsub.s32 2, %v1710_v8  ;;  %v1728_v14 = vsub.s32 3, %v1710_v8  ;;  %v1539_v16 = vld [vmem:[%s2197_s2] ss:$0 sm:$0xff]  ;;  %v1736_v19 = vsub.s32 1, %v1710_v8 }
   0x5   :  { %1566 = vmatpush3.msra.mxu0 %v20_v4  ;;  %1567 = vmatprep.mubr.msk.f32.mxu0 %vm1650_vm0, %v1649_v2  ;;  %v1739_v20 = vsub.s32 4, %v1710_v8  ;;  %s1652_s2 = smov 96   ;;  %v1746_v29 = vsub.s32 5, %v1710_v8  ;;  %v257_v34 = vunpack.c.0.s8 %v256_v33 }
   0x6   :  { %138 = vxpose.xlu1.b32.end [2/2] (short) (narrow) %v30_v5, 8  ;;  %32 = vxpose.xlu0.b32.end [2/2] (short) (narrow) %v28_v6, 8  ;;  %v579_v11 = vrot.slane %v1718_v10, %v1713_v9  ;;  %v593_v13 = vrot.slane %v1718_v10, %v1723_v12  ;;  %v600_v15 = vrot.slane %v1718_v10, %v1728_v14 }
   0x7   :  { %1573 = vmatpush3.msra.mxu1 %v20_v4  ;;  %1574 = vmatprep.mubr.msk.f32.mxu1 %vm1650_vm0, %v1649_v2  ;;  %v586_v21 = vrot.slane %v1718_v10, %v1736_v19  ;;  %v607_v22 = vrot.slane %v1718_v10, %v1739_v20  ;;  %v614_v31 = vrot.slane %v1718_v10, %v1746_v29 }
   0x8   :  { %v260_v35 = vsub.s32 %v257_v34, %v1710_v8 }
  0x24   :  { %581 = vbcast.lane.b32.xlu1 %v579_v11, 256 }
  0x28   :  { %595 = vbcast.lane.b32.xlu1 %v593_v13, 256 }
  0x2c   :  { %602 = vbcast.lane.b32.xlu1 %v600_v15, 256 }
  0x2f   :  { %247 = vrot.lane.b32.xlu0 %v1539_v16, %s1651_s7 }
  0x33   :  { %588 = vbcast.lane.b32.xlu0 %v586_v21, 256 }
  0x37   :  { %609 = vbcast.lane.b32.xlu0 %v607_v22, 256 }
  0x7e   :  { %v153_v17 = vpop.trf.xlu1  ;;  %v47_v18 = vpop.trf.xlu0 }
  0x7f   :  { %1568 = vmatmul.mubr.msk.f32.vlgmr.msra.gmra.mxu0 %vm63_vm1, %v47_v18  ;;  %1575 = vmatmul.mubr.msk.f32.vlgmr.msra.gmra.mxu1 %vm63_vm1, %v153_v17 }
  0x96   :  { %v1751_v36 = vpop.permute.xlu1 %581 }
  0x9a   :  { %v1753_v45 = vpop.permute.xlu1 %595 }
  0x9e   :  { %v1759_v55 = vpop.permute.xlu1 %602 }
  0xa1   :  { %v248_v23 = vpop.permute.xlu0 %247 }
 0x13f   :  { %v133_v24 = vpop.f32.mrf.mxu0  ;;  %v238_v25 = vpop.f32.mrf.mxu1 }
 0x140   :  { %v250_v26 = vadd.f32 %v248_v23, %v133_v24  ;;  %v251_v30 = vadd.f32 %v248_v23, %v238_v25  ;;  %v254_v37 = vcombine.high %v133_v24, %v133_v24  ;;  %v261_v38 = vrot.slane %v133_v24, %v260_v35 }
 0x141   :  { %v1569_v27 = vpop.f32.mrf.mxu0  ;;  %v1576_v28 = vpop.f32.mrf.mxu1  ;;  %v303_v39 = vcombine.high %v238_v25, %v238_v25  ;;  %v310_v40 = vrot.slane %v238_v25, %v260_v35 }
 0x142   :  { %434 = vrot.lane.b32.xlu1 %v250_v26, %s1652_s2  ;;  %v268_v41 = vrot.slane %v254_v37, %v260_v35  ;;  %v269_v42 = vcombine.high %v261_v38, %v261_v38  ;;  %v277_v46 = vrot.slane %v261_v38, %v260_v35  ;;  %v1794_v26 = vld [vmem:[%s2198_s3] ss:$0 sm:$0xff] }
 0x143   :  { %v317_v43 = vrot.slane %v303_v39, %v260_v35  ;;  %v318_v44 = vcombine.high %v310_v40, %v310_v40  ;;  %v326_v50 = vrot.slane %v310_v40, %v260_v35 }
 0x144   :  { %v270_v47 = vcombine.high %v268_v41, %v268_v41  ;;  %v291_v48 = vrot.slane %v269_v42, %v260_v35  ;;  %v1755_v52 = vrot.slane %v268_v41, %v260_v35  ;;  %v299_v53 = vcombine.high %v277_v46, %v277_v46 }
 0x145   :  { %v319_v49 = vcombine.high %v317_v43, %v317_v43  ;;  %v340_v51 = vrot.slane %v318_v44, %v260_v35  ;;  %v1757_v54 = vrot.slane %v317_v43, %v260_v35  ;;  %v348_v59 = vcombine.high %v326_v50, %v326_v50 }
 0x146   :  { %436 = vrot.lane.b32.xlu1 %v251_v30, %s1652_s2  ;;  %v1761_v56 = vrot.slane %v270_v47, %v260_v35  ;;  %v301_v57 = vcombine.high %v291_v48, %v291_v48  ;;  %v300_v61 = vcombine.high %v1755_v52, %v1755_v52  ;;  %v355_v62 = vrot.slane %v277_v46, %v1713_v9 }
 0x147   :  { %v1763_v58 = vrot.slane %v319_v49, %v260_v35  ;;  %v350_v60 = vcombine.high %v340_v51, %v340_v51  ;;  %v359_v63 = vrot.slane %v291_v48, %v1713_v9  ;;  %v363_v2 = vrot.slane %v299_v53, %v1713_v9 }
 0x148   :  { %v371_v3 = vrot.slane %v1755_v52, %v1713_v9  ;;  %v349_v4 = vcombine.high %v1757_v54, %v1757_v54  ;;  %v302_v5 = vcombine.high %v1761_v56, %v1761_v56  ;;  %v387_v11 = vrot.slane %v326_v50, %v1713_v9 }
 0x149   :  { %v351_v6 = vcombine.high %v1763_v58, %v1763_v58  ;;  %v367_v13 = vrot.slane %v301_v57, %v1713_v9  ;;  %v391_v15 = vrot.slane %v340_v51, %v1713_v9  ;;  %v395_v16 = vrot.slane %v348_v59, %v1713_v9 }
 0x14a   :  { %616 = vbcast.lane.b32.xlu1 %v614_v31, 256  ;;  %v403_v17 = vrot.slane %v1757_v54, %v1713_v9  ;;  %v399_v21 = vrot.slane %v350_v60, %v1713_v9  ;;  %v407_v28 = vrot.slane %v1763_v58, %v1713_v9  ;;  %v375_v30 = vrot.slane %v1761_v56, %v1713_v9 }
 0x14b   :  { %v1804_v31 = vrot.slane %v349_v4, %v1713_v9 }
 0x1b4   :  { %v1784_v18 = vpop.permute.xlu1 %434 }
 0x1b5   :  { %v441_v22 = vadd.f32 %v1784_v18, %v359_v63  ;;  %v440_v23 = vadd.f32 %v1784_v18, %v355_v62  ;;  %v442_v24 = vadd.f32 %v1784_v18, %v363_v2  ;;  %v443_v25 = vadd.f32 %v1784_v18, %v367_v13 }
 0x1b6   :  { %v1797_v27 = vadd.f32 %v1784_v18, %v371_v3  ;;  %v445_v57 = vadd.f32 %v1784_v18, %v375_v30 }
 0x1b7   :  { %vm457_vm3 = vcmp.gt.f32.partialorder %v441_v22, 0.0  ;;  %v473_v32 = vmul.f32 0.2, %v441_v22  ;;  %vm456_vm4 = vcmp.gt.f32.partialorder %v440_v23, 0.0  ;;  %v472_v33 = vmul.f32 0.2, %v440_v23 }
 0x1b8   :  { %v1806_v34 = vpop.permute.xlu1 %436  ;;  %vm458_vm5 = vcmp.gt.f32.partialorder %v442_v24, 0.0  ;;  %v474_v35 = vmul.f32 0.2, %v442_v24  ;;  %vm459_vm6 = vcmp.gt.f32.partialorder %v443_v25, 0.0  ;;  %v475_v37 = vmul.f32 0.2, %v443_v25 }
 0x1b9   :  { %v489_v38 = vsel %vm457_vm3, %v441_v22, %v473_v32  ;;  %v488_v39 = vsel %vm456_vm4, %v440_v23, %v472_v33  ;;  %v449_v40 = vadd.f32 %v1806_v34, %v391_v15  ;;  %v448_v41 = vadd.f32 %v1806_v34, %v387_v11 }
 0x1ba   :  { %v511_v42 = vmul.f32 %v1794_v26, %v489_v38  ;;  %v510_v43 = vmul.f32 %v1794_v26, %v488_v39  ;;  %v450_v44 = vadd.f32 %v1806_v34, %v395_v16  ;;  %v490_v46 = vsel %vm458_vm5, %v442_v24, %v474_v35 }
 0x1bb   :  { %vm465_vm7 = vcmp.gt.f32.partialorder %v449_v40, 0.0  ;;  %v481_v47 = vmul.f32 0.2, %v449_v40  ;;  %vm464_vm8 = vcmp.gt.f32.partialorder %v448_v41, 0.0  ;;  %v480_v48 = vmul.f32 0.2, %v448_v41 }
 0x1bc   :  { %v530_v49 = vsel %vm526_vm2, %v511_v42, 0.0  ;;  %v527_v50 = vsel %vm526_vm2, %v510_v43, 0.0  ;;  %vm466_vm9 = vcmp.gt.f32.partialorder %v450_v44, 0.0  ;;  %v482_v51 = vmul.f32 0.2, %v450_v44 }
 0x1bd   :  { %531 = vadd.xlane.f32.xlu0 %v530_v49  ;;  %528 = vadd.xlane.f32.xlu1 %v527_v50  ;;  %v497_v53 = vsel %vm465_vm7, %v449_v40, %v481_v47  ;;  %v496_v54 = vsel %vm464_vm8, %v448_v41, %v480_v48  ;;  %v451_v63 = vadd.f32 %v1806_v34, %v399_v21  ;;  %vm460_vm12 = vcmp.gt.f32.partialorder %v1797_v27, 0.0 }
 0x1be   :  { %v519_v59 = vmul.f32 %v1794_v26, %v497_v53  ;;  %v518_v60 = vmul.f32 %v1794_v26, %v496_v54  ;;  %v498_v62 = vsel %vm466_vm9, %v450_v44, %v482_v51  ;;  %v512_v3 = vmul.f32 %v1794_v26, %v490_v46 }
 0x1bf   :  { %v520_v2 = vmul.f32 %v1794_v26, %v498_v62  ;;  %v491_v4 = vsel %vm459_vm6, %v443_v25, %v475_v37  ;;  %v452_v11 = vadd.f32 %v1806_v34, %v403_v17  ;;  %vm467_vm10 = vcmp.gt.f32.partialorder %v451_v63, 0.0 }
 0x1c0   :  { %v554_v13 = vsel %vm526_vm2, %v519_v59, 0.0  ;;  %v551_v15 = vsel %vm526_vm2, %v518_v60, 0.0  ;;  %v483_v16 = vmul.f32 0.2, %v451_v63  ;;  %v379_v21 = vrot.slane %v300_v61, %v1713_v9 }
 0x1c1   :  { %555 = vadd.xlane.f32.xlu0 %v554_v13  ;;  %552 = vadd.xlane.f32.xlu1 %v551_v15  ;;  %vm468_vm11 = vcmp.gt.f32.partialorder %v452_v11, 0.0  ;;  %v484_v22 = vmul.f32 0.2, %v452_v11  ;;  %v383_v17 = vrot.slane %v302_v5, %v1713_v9  ;;  %v476_v24 = vmul.f32 0.2, %v1797_v27 }
 0x1c2   :  { %v499_v23 = vsel %vm467_vm10, %v451_v63, %v483_v16  ;;  %v453_v25 = vadd.f32 %v1806_v34, %v407_v28  ;;  %v557_v30 = vsel %vm526_vm2, %v520_v2, 0.0  ;;  %v533_v32 = vsel %vm526_vm2, %v512_v3, 0.0 }
 0x1c3   :  { %v513_v33 = vmul.f32 %v1794_v26, %v491_v4  ;;  %v446_v52 = vadd.f32 %v1784_v18, %v379_v21  ;;  %v521_v61 = vmul.f32 %v1794_v26, %v499_v23  ;;  %v500_v35 = vsel %vm468_vm11, %v452_v11, %v484_v22  ;;  %v617_v23 = vpop.permute.xlu1 %616 }
 0x1c4   :  { %v485_v56 = vmul.f32 0.2, %v453_v25  ;;  %v477_v5 = vmul.f32 0.2, %v445_v57  ;;  %v492_v37 = vsel %vm460_vm12, %v1797_v27, %v476_v24  ;;  %vm469_vm13 = vcmp.gt.f32.partialorder %v453_v25, 0.0 }
 0x1c5   :  { %558 = vadd.xlane.f32.xlu0 %v557_v30  ;;  %534 = vadd.xlane.f32.xlu1 %v533_v32  ;;  %vm461_vm14 = vcmp.gt.f32.partialorder %v445_v57, 0.0  ;;  %v454_v28 = vadd.f32 %v1806_v34, %v1804_v31  ;;  %v536_v38 = vsel %vm526_vm2, %v513_v33, 0.0  ;;  %v522_v39 = vmul.f32 %v1794_v26, %v500_v35 }
 0x1c6   :  { %v415_v40 = vrot.slane %v351_v6, %v1713_v9  ;;  %v447_v41 = vadd.f32 %v1784_v18, %v383_v17  ;;  %v560_v42 = vsel %vm526_vm2, %v521_v61, 0.0  ;;  %v514_v27 = vmul.f32 %v1794_v26, %v492_v37  ;;  %v589_v17 = vpop.permute.xlu0 %588 }
 0x1c7   :  { %v501_v43 = vsel %vm469_vm13, %v453_v25, %v485_v56  ;;  %v493_v44 = vsel %vm461_vm14, %v445_v57, %v477_v5  ;;  %v486_v31 = vmul.f32 0.2, %v454_v28  ;;  %v478_v46 = vmul.f32 0.2, %v446_v52 }
 0x1c8   :  { %v455_v47 = vadd.f32 %v1806_v34, %v415_v40  ;;  %vm470_vm15 = vcmp.gt.f32.partialorder %v454_v28, 0.0  ;;  %vm462_vm0 = vcmp.gt.f32.partialorder %v446_v52, 0.0  ;;  %v1654_v48 = vmov 0  }
 0x1c9   :  { %561 = vadd.xlane.f32.xlu0 %v560_v42  ;;  %537 = vadd.xlane.f32.xlu1 %v536_v38  ;;  %v563_v58 = vsel %vm526_vm2, %v522_v39, 0.0  ;;  %v539_v6 = vsel %vm526_vm2, %v514_v27, 0.0  ;;  %v523_v18 = vmul.f32 %v1794_v26, %v501_v43  ;;  %v515_v49 = vmul.f32 %v1794_v26, %v493_v44 }
 0x1ca   :  { %1594 = vset.pattern.permute.xlu1 %v1654_v48  ;;  %1593 = vset.pattern.permute.xlu0 %v1654_v48  ;;  %v502_v50 = vsel %vm470_vm15, %v454_v28, %v486_v31  ;;  %v494_v51 = vsel %vm462_vm0, %v446_v52, %v478_v46  ;;  %v487_v53 = vmul.f32 0.2, %v455_v47  ;;  %v479_v54 = vmul.f32 0.2, %v447_v41  ;;  %v610_v24 = vpop.permute.xlu0 %609 }
 0x1cb   :  { %vm471_vm1 = vcmp.gt.f32.partialorder %v455_v47, 0.0  ;;  %vm463_vm3 = vcmp.gt.f32.partialorder %v447_v41, 0.0  ;;  %v566_v34 = vsel %vm526_vm2, %v523_v18, 0.0  ;;  %v542_v57 = vsel %vm526_vm2, %v515_v49, 0.0 }
 0x1cc   :  { %v524_v59 = vmul.f32 %v1794_v26, %v502_v50  ;;  %v516_v60 = vmul.f32 %v1794_v26, %v494_v51  ;;  %v503_v62 = vsel %vm471_vm1, %v455_v47, %v487_v53  ;;  %v495_v63 = vsel %vm463_vm3, %v447_v41, %v479_v54 }
 0x1cd   :  { %564 = vadd.xlane.f32.xlu0 %v563_v58  ;;  %540 = vadd.xlane.f32.xlu1 %v539_v6  ;;  %v525_v4 = vmul.f32 %v1794_v26, %v503_v62  ;;  %v517_v11 = vmul.f32 %v1794_v26, %v495_v63  ;;  %v1869_v16 = vsub.s32 7, %v1710_v8  ;;  %v1874_v21 = vsub.s32 6, %v1710_v8 }
 0x1ce   :  { %v569_v2 = vsel %vm526_vm2, %v524_v59, 0.0  ;;  %v545_v3 = vsel %vm526_vm2, %v516_v60, 0.0  ;;  %vm786_vm4 = vcmask 1041409   ;;  %vm788_vm5 = vcmask 1042434  }
 0x1cf   :  { %v572_v13 = vsel %vm526_vm2, %v525_v4, 0.0  ;;  %v548_v15 = vsel %vm526_vm2, %v517_v11, 0.0  ;;  %v628_v22 = vrot.slane %v1718_v10, %v1869_v16  ;;  %v621_v26 = vrot.slane %v1718_v10, %v1874_v21 }
 0x1d0   :  { %vm809_vm2 = vcmask 64512   ;;  %vm790_vm6 = vcmask 1043459   ;;  %vm792_vm7 = vcmask 1044484   ;;  %vm794_vm8 = vcmask 1045509  }
 0x1d1   :  { %567 = vadd.xlane.f32.xlu0 %v566_v34  ;;  %543 = vadd.xlane.f32.xlu1 %v542_v57  ;;  %vm796_vm9 = vcmask 1046534   ;;  %vm798_vm10 = vcmask 1047559  }
 0x1d2   :  { %1579 = vmatprep.mubr.msk.f32.mxu0 %vm809_vm2, %v1693_v1  ;;  %1584 = vmatprep.mubr.msk.f32.mxu1 %vm809_vm2, %v1688_v0 }
 0x1d5   :  { %570 = vadd.xlane.f32.xlu0 %v569_v2  ;;  %546 = vadd.xlane.f32.xlu1 %v545_v3  ;;  %v721_v3 = vand.u32 127, %v258_v7 }
 0x1d7   :  { %v1938_v1 = vsub.s32 %v721_v3, %v1710_v8 }
 0x1d9   :  { %573 = vadd.xlane.f32.xlu0 %v572_v13  ;;  %549 = vadd.xlane.f32.xlu1 %v548_v15 }
 0x1ea   :  { %630 = vbcast.lane.b32.xlu1 %v628_v22, 256 }
 0x1ef   :  { %623 = vbcast.lane.b32.xlu0 %v621_v26, 256 }
 0x246   :  { %v529_v25 = vpop.xlane.xlu1 %528  ;;  %v532_v30 = vpop.xlane.xlu0 %531 }
 0x247   :  { %v1879_v32 = vadd.f32 %v1751_v36, %v529_v25  ;;  %v1881_v33 = vadd.f32 %v589_v17, %v532_v30 }
 0x249   :  { %673 = vperm.xlu0 %1593, %v1879_v32   ;;  %676 = vperm.xlu1 %1594, %v1881_v33  }
 0x24a   :  { %v553_v52 = vpop.xlane.xlu1 %552  ;;  %v556_v61 = vpop.xlane.xlu0 %555 }
 0x24b   :  { %v1886_v35 = vadd.f32 %v1751_v36, %v553_v52  ;;  %v1888_v10 = vadd.f32 %v589_v17, %v556_v61 }
 0x24d   :  { %697 = vperm.xlu1 %1594, %v1886_v35   ;;  %700 = vperm.xlu0 %1593, %v1888_v10  }
 0x24e   :  { %v535_v56 = vpop.xlane.xlu1 %534  ;;  %v559_v5 = vpop.xlane.xlu0 %558 }
 0x24f   :  { %v1893_v37 = vadd.f32 %v1753_v45, %v535_v56  ;;  %v1896_v28 = vadd.f32 %v1753_v45, %v559_v5 }
 0x251   :  { %679 = vperm.xlu1 %1594, %v1893_v37   ;;  %703 = vperm.xlu0 %1593, %v1896_v28  }
 0x252   :  { %v538_v36 = vpop.xlane.xlu1 %537  ;;  %v562_v38 = vpop.xlane.xlu0 %561 }
 0x253   :  { %v1901_v39 = vadd.f32 %v1759_v55, %v538_v36  ;;  %v1904_v40 = vadd.f32 %v1759_v55, %v562_v38 }
 0x255   :  { %682 = vperm.xlu1 %1594, %v1901_v39   ;;  %706 = vperm.xlu0 %1593, %v1904_v40  }
 0x256   :  { %v541_v41 = vpop.xlane.xlu1 %540  ;;  %v565_v42 = vpop.xlane.xlu0 %564 }
 0x257   :  { %v1908_v45 = vadd.f32 %v610_v24, %v541_v41  ;;  %v1910_v27 = vadd.f32 %v610_v24, %v565_v42 }
 0x259   :  { %685 = vperm.xlu1 %1594, %v1908_v45   ;;  %709 = vperm.xlu0 %1593, %v1910_v27  }
 0x25a   :  { %v544_v43 = vpop.xlane.xlu1 %543  ;;  %v568_v44 = vpop.xlane.xlu0 %567 }
 0x25b   :  { %v1914_v31 = vadd.f32 %v617_v23, %v544_v43  ;;  %v1916_v55 = vadd.f32 %v617_v23, %v568_v44 }
 0x25d   :  { %688 = vperm.xlu1 %1594, %v1914_v31   ;;  %712 = vperm.xlu0 %1593, %v1916_v55  }
 0x25e   :  { %v547_v46 = vpop.xlane.xlu1 %546  ;;  %v571_v47 = vpop.xlane.xlu0 %570 }
 0x262   :  { %v550_v48 = vpop.xlane.xlu1 %549  ;;  %v574_v58 = vpop.xlane.xlu0 %573 }
 0x266   :  { %v624_v6 = vpop.permute.xlu0 %623  ;;  %v631_v50 = vpop.permute.xlu1 %630 }
 0x267   :  { %v1920_v18 = vadd.f32 %v624_v6, %v547_v46  ;;  %v1922_v49 = vadd.f32 %v624_v6, %v571_v47  ;;  %v1926_v51 = vadd.f32 %v631_v50, %v550_v48  ;;  %v1928_v53 = vadd.f32 %v631_v50, %v574_v58 }
 0x269   :  { %715 = vperm.xlu0 %1593, %v1922_v49   ;;  %691 = vperm.xlu1 %1594, %v1920_v18  }
 0x26d   :  { %718 = vperm.xlu0 %1593, %v1928_v53   ;;  %694 = vperm.xlu1 %1594, %v1926_v51  }
 0x2c4   :  { %v677_v54 = vpop.permute.xlu1 %676  ;;  %v674_v34 = vpop.permute.xlu0 %673 }
 0x2c5   :  { %v729_v15 = vrot.slane %v677_v54, %v1938_v1  ;;  %v725_v22 = vrot.slane %v674_v34, %v1938_v1 }
 0x2c7   :  { %v787_v56 = vsel %vm786_vm4, %v729_v15, %v725_v22 }
 0x2c8   :  { %v698_v57 = vpop.permute.xlu1 %697  ;;  %v701_v59 = vpop.permute.xlu0 %700 }
 0x2c9   :  { %v757_v26 = vrot.slane %v698_v57, %v1938_v1  ;;  %v761_v17 = vrot.slane %v701_v59, %v1938_v1 }
 0x2cb   :  { %v800_v5 = vsel %vm786_vm4, %v761_v17, %v757_v26 }
 0x2cc   :  { %v680_v60 = vpop.permute.xlu1 %679  ;;  %v704_v62 = vpop.permute.xlu0 %703 }
 0x2cd   :  { %v733_v23 = vrot.slane %v680_v60, %v1938_v1  ;;  %v765_v7 = vrot.slane %v704_v62, %v1938_v1 }
 0x2cf   :  { %v789_v41 = vsel %vm788_vm5, %v733_v23, %v787_v56  ;;  %v801_v42 = vsel %vm788_vm5, %v765_v7, %v800_v5 }
 0x2d0   :  { %v683_v63 = vpop.permute.xlu1 %682  ;;  %v707_v2 = vpop.permute.xlu0 %706 }
 0x2d1   :  { %v737_v8 = vrot.slane %v683_v63, %v1938_v1  ;;  %v769_v24 = vrot.slane %v707_v2, %v1938_v1 }
 0x2d3   :  { %v791_v46 = vsel %vm790_vm6, %v737_v8, %v789_v41  ;;  %v802_v47 = vsel %vm790_vm6, %v769_v24, %v801_v42 }
 0x2d4   :  { %v686_v4 = vpop.permute.xlu1 %685  ;;  %v710_v11 = vpop.permute.xlu0 %709 }
 0x2d5   :  { %v741_v25 = vrot.slane %v686_v4, %v1938_v1  ;;  %v773_v30 = vrot.slane %v710_v11, %v1938_v1 }
 0x2d7   :  { %v793_v48 = vsel %vm792_vm7, %v741_v25, %v791_v46  ;;  %v803_v58 = vsel %vm792_vm7, %v773_v30, %v802_v47 }
 0x2d8   :  { %v689_v0 = vpop.permute.xlu1 %688  ;;  %v713_v13 = vpop.permute.xlu0 %712 }
 0x2d9   :  { %v745_v36 = vrot.slane %v689_v0, %v1938_v1  ;;  %v777_v38 = vrot.slane %v713_v13, %v1938_v1 }
 0x2db   :  { %v795_v54 = vsel %vm794_vm8, %v745_v36, %v793_v48  ;;  %v804_v34 = vsel %vm794_vm8, %v777_v38, %v803_v58 }
 0x2e4   :  { %v692_v52 = vpop.permute.xlu1 %691  ;;  %v716_v61 = vpop.permute.xlu0 %715 }
 0x2e5   :  { %v749_v43 = vrot.slane %v692_v52, %v1938_v1  ;;  %v781_v44 = vrot.slane %v716_v61, %v1938_v1 }
 0x2e7   :  { %v797_v60 = vsel %vm796_vm9, %v749_v43, %v795_v54  ;;  %v805_v62 = vsel %vm796_vm9, %v781_v44, %v804_v34 }
 0x2e8   :  { %v695_v6 = vpop.permute.xlu1 %694  ;;  %v719_v50 = vpop.permute.xlu0 %718 }
 0x2e9   :  { %v753_v57 = vrot.slane %v695_v6, %v1938_v1  ;;  %v785_v59 = vrot.slane %v719_v50, %v1938_v1 }
 0x2eb   :  { %v799_v63 = vsel %vm798_vm10, %v753_v57, %v797_v60  ;;  %v806_v2 = vsel %vm798_vm10, %v785_v59, %v805_v62 }
 0x2ec   :  { %v810_v3 = vsel %vm809_vm2, %v799_v63, -inf  ;;  %v813_v4 = vsel %vm809_vm2, %v806_v2, -inf }
 0x2ed   :  { %811 = vmax.xlane.f32.xlu1 %v810_v3  ;;  %814 = vmax.xlane.f32.xlu0 %v813_v4 }
 0x376   :  { %v1972_v11 = vpop.xlane.xlu1 %811  ;;  %v1978_v15 = vpop.xlane.xlu0 %814 }
 0x377   :  { %v821_v0 = vrot.slane %v1972_v11, %v1713_v9  ;;  %v825_v13 = vrot.slane %v1972_v11, %v1736_v19  ;;  %v853_v7 = vrot.slane %v1978_v15, %v1713_v9  ;;  %v857_v8 = vrot.slane %v1978_v15, %v1736_v19 }
 0x378   :  { %v829_v24 = vrot.slane %v1972_v11, %v1723_v12  ;;  %v861_v25 = vrot.slane %v1978_v15, %v1723_v12  ;;  %v833_v30 = vrot.slane %v1972_v11, %v1728_v14  ;;  %v865_v61 = vrot.slane %v1978_v15, %v1728_v14 }
 0x379   :  { %v898_v22 = vsub.f32 %v1879_v32, %v821_v0  ;;  %v899_v26 = vsub.f32 %v1881_v33, %v825_v13  ;;  %v906_v32 = vsub.f32 %v1886_v35, %v853_v7  ;;  %v907_v33 = vsub.f32 %v1888_v10, %v857_v8 }
 0x37a   :  { %v900_v52 = vsub.f32 %v1893_v37, %v829_v24  ;;  %v908_v56 = vsub.f32 %v1896_v28, %v861_v25  ;;  %v837_v38 = vrot.slane %v1972_v11, %v1739_v20  ;;  %v901_v41 = vsub.f32 %v1901_v39, %v833_v30 }
 0x37b   :  { %v914_v17 = vmul.f32 1.442695, %v898_v22  ;;  %v916_v23 = vmul.f32 1.442695, %v899_v26  ;;  %v930_v5 = vmul.f32 1.442695, %v906_v32  ;;  %v869_v10 = vrot.slane %v1978_v15, %v1739_v20 }
 0x37c   :  { %v932_v36 = vmul.f32 1.442695, %v907_v33  ;;  %v918_v35 = vmul.f32 1.442695, %v900_v52  ;;  %v909_v42 = vsub.f32 %v1904_v40, %v865_v61  ;;  %v934_v37 = vmul.f32 1.442695, %v908_v56 }
 0x37d   :  { %1595 = vpow2.f32 %v914_v17  ;;  %v841_v43 = vrot.slane %v1972_v11, %v1746_v29  ;;  %v902_v28 = vsub.f32 %v1908_v45, %v837_v38  ;;  %v920_v44 = vmul.f32 1.442695, %v901_v41 }
 0x37e   :  { %1597 = vpow2.f32 %v916_v23  ;;  %v873_v39 = vrot.slane %v1978_v15, %v1746_v29  ;;  %v910_v47 = vsub.f32 %v1910_v27, %v869_v10  ;;  %v936_v48 = vmul.f32 1.442695, %v909_v42 }
 0x37f   :  { %1599 = vpow2.f32 %v930_v5  ;;  %v845_v40 = vrot.slane %v1972_v11, %v1874_v21  ;;  %v903_v45 = vsub.f32 %v1914_v31, %v841_v43  ;;  %v922_v6 = vmul.f32 1.442695, %v902_v28 }
 0x380   :  { %1601 = vpow2.f32 %v932_v36  ;;  %v877_v50 = vrot.slane %v1978_v15, %v1874_v21  ;;  %v911_v27 = vsub.f32 %v1916_v55, %v873_v39  ;;  %v938_v54 = vmul.f32 1.442695, %v910_v47 }
 0x381   :  { %1603 = vpow2.f32 %v918_v35  ;;  %v849_v34 = vrot.slane %v1972_v11, %v1869_v16  ;;  %v904_v57 = vsub.f32 %v1920_v18, %v845_v40  ;;  %v924_v59 = vmul.f32 1.442695, %v903_v45 }
 0x382   :  { %1605 = vpow2.f32 %v934_v37  ;;  %v881_v31 = vrot.slane %v1978_v15, %v1869_v16  ;;  %v912_v62 = vsub.f32 %v1922_v49, %v877_v50  ;;  %v940_v63 = vmul.f32 1.442695, %v911_v27 }
 0x383   :  { %1607 = vpow2.f32 %v920_v44  ;;  %v905_v55 = vsub.f32 %v1926_v51, %v849_v34  ;;  %v926_v18 = vmul.f32 1.442695, %v904_v57 }
 0x384   :  { %1609 = vpow2.f32 %v936_v48  ;;  %v913_v4 = vsub.f32 %v1928_v53, %v881_v31  ;;  %v942_v11 = vmul.f32 1.442695, %v912_v62 }
 0x385   :  { %1611 = vpow2.f32 %v922_v6  ;;  %v928_v49 = vmul.f32 1.442695, %v905_v55 }
 0x386   :  { %1613 = vpow2.f32 %v938_v54  ;;  %v944_v51 = vmul.f32 1.442695, %v913_v4 }
 0x387   :  { %1615 = vpow2.f32 %v924_v59 }
 0x388   :  { %1617 = vpow2.f32 %v940_v63 }
 0x389   :  { %1619 = vpow2.f32 %v926_v18 }
 0x38a   :  { %v2007_v46 = vpop.eup %1595  ;;  %1621 = vpow2.f32 %v942_v11 }
 0x38b   :  { %v2012_v58 = vpop.eup %1597  ;;  %963 = vperm.xlu0 %1593, %v2007_v46   ;;  %1623 = vpow2.f32 %v928_v49 }
 0x38c   :  { %966 = vperm.xlu1 %1594, %v2012_v58   ;;  %v2025_v60 = vpop.eup %1599  ;;  %1625 = vpow2.f32 %v944_v51 }
 0x38d   :  { %v2030_v2 = vpop.eup %1601 }
 0x38e   :  { %v2035_v3 = vpop.eup %1603 }
 0x38f   :  { %990 = vperm.xlu0 %1593, %v2030_v2   ;;  %v2038_v0 = vpop.eup %1605 }
 0x390   :  { %987 = vperm.xlu1 %1594, %v2025_v60   ;;  %v2042_v13 = vpop.eup %1607 }
 0x391   :  { %v2044_v15 = vpop.eup %1609 }
 0x392   :  { %v2048_v53 = vpop.eup %1611 }
 0x393   :  { %993 = vperm.xlu0 %1593, %v2038_v0   ;;  %v2050_v22 = vpop.eup %1613 }
 0x394   :  { %969 = vperm.xlu1 %1594, %v2035_v3   ;;  %v2054_v26 = vpop.eup %1615 }
 0x395   :  { %v2056_v17 = vpop.eup %1617 }
 0x396   :  { %v2060_v23 = vpop.eup %1619 }
 0x397   :  { %996 = vperm.xlu0 %1593, %v2044_v15   ;;  %v2062_v7 = vpop.eup %1621 }
 0x398   :  { %972 = vperm.xlu1 %1594, %v2042_v13   ;;  %v2066_v8 = vpop.eup %1623 }
 0x399   :  { %v2068_v24 = vpop.eup %1625 }
 0x39b   :  { %999 = vperm.xlu0 %1593, %v2050_v22  }
 0x39c   :  { %975 = vperm.xlu1 %1594, %v2048_v53  }
 0x39f   :  { %1002 = vperm.xlu0 %1593, %v2056_v17  }
 0x3a0   :  { %978 = vperm.xlu1 %1594, %v2054_v26  }
 0x3a3   :  { %1005 = vperm.xlu0 %1593, %v2062_v7  }
 0x3a4   :  { %981 = vperm.xlu1 %1594, %v2060_v23  }
 0x3a7   :  { %1008 = vperm.xlu0 %1593, %v2068_v24  }
 0x3a8   :  { %984 = vperm.xlu1 %1594, %v2066_v8  }
 0x406   :  { %v964_v32 = vpop.permute.xlu0 %963 }
 0x407   :  { %v967_v25 = vpop.permute.xlu1 %966  ;;  %v1013_v10 = vrot.slane %v964_v32, %v1938_v1 }
 0x408   :  { %v1017_v35 = vrot.slane %v967_v25, %v1938_v1 }
 0x40a   :  { %v991_v30 = vpop.permute.xlu0 %990  ;;  %v1074_v45 = vsel %vm786_vm4, %v1017_v35, %v1013_v10 }
 0x40b   :  { %v988_v33 = vpop.permute.xlu1 %987  ;;  %v1049_v43 = vrot.slane %v991_v30, %v1938_v1 }
 0x40c   :  { %v1045_v37 = vrot.slane %v988_v33, %v1938_v1 }
 0x40e   :  { %v994_v61 = vpop.permute.xlu0 %993  ;;  %v1081_v54 = vsel %vm786_vm4, %v1049_v43, %v1045_v37 }
 0x40f   :  { %v970_v52 = vpop.permute.xlu1 %969  ;;  %v1053_v44 = vrot.slane %v994_v61, %v1938_v1 }
 0x410   :  { %v1021_v28 = vrot.slane %v970_v52, %v1938_v1 }
 0x411   :  { %v1082_v31 = vsel %vm788_vm5, %v1053_v44, %v1081_v54 }
 0x412   :  { %v997_v5 = vpop.permute.xlu0 %996  ;;  %v1075_v34 = vsel %vm788_vm5, %v1021_v28, %v1074_v45 }
 0x413   :  { %v973_v56 = vpop.permute.xlu1 %972  ;;  %v1057_v47 = vrot.slane %v997_v5, %v1938_v1 }
 0x414   :  { %v1025_v39 = vrot.slane %v973_v56, %v1938_v1 }
 0x415   :  { %v1083_v55 = vsel %vm790_vm6, %v1057_v47, %v1082_v31 }
 0x416   :  { %v1000_v38 = vpop.permute.xlu0 %999  ;;  %v1076_v62 = vsel %vm790_vm6, %v1025_v39, %v1075_v34 }
 0x417   :  { %v976_v36 = vpop.permute.xlu1 %975  ;;  %v1061_v6 = vrot.slane %v1000_v38, %v1938_v1 }
 0x418   :  { %v1029_v48 = vrot.slane %v976_v36, %v1938_v1 }
 0x419   :  { %v1084_v11 = vsel %vm792_vm7, %v1061_v6, %v1083_v55 }
 0x41a   :  { %v1003_v42 = vpop.permute.xlu0 %1002  ;;  %v1077_v18 = vsel %vm792_vm7, %v1029_v48, %v1076_v62 }
 0x41b   :  { %v979_v41 = vpop.permute.xlu1 %978  ;;  %v1065_v57 = vrot.slane %v1003_v42, %v1938_v1 }
 0x41c   :  { %v1033_v50 = vrot.slane %v979_v41, %v1938_v1 }
 0x41d   :  { %v1085_v32 = vsel %vm794_vm8, %v1065_v57, %v1084_v11 }
 0x41e   :  { %v1006_v27 = vpop.permute.xlu0 %1005  ;;  %v1078_v49 = vsel %vm794_vm8, %v1033_v50, %v1077_v18 }
 0x41f   :  { %v982_v40 = vpop.permute.xlu1 %981  ;;  %v1069_v63 = vrot.slane %v1006_v27, %v1938_v1 }
 0x420   :  { %v1037_v59 = vrot.slane %v982_v40, %v1938_v1 }
 0x421   :  { %v1086_v61 = vsel %vm796_vm9, %v1069_v63, %v1085_v32 }
 0x422   :  { %v1009_v25 = vpop.permute.xlu0 %1008  ;;  %v1079_v30 = vsel %vm796_vm9, %v1037_v59, %v1078_v49 }
 0x423   :  { %v985_v4 = vpop.permute.xlu1 %984  ;;  %v1073_v33 = vrot.slane %v1009_v25, %v1938_v1 }
 0x424   :  { %v1041_v51 = vrot.slane %v985_v4, %v1938_v1 }
 0x425   :  { %v1087_v5 = vsel %vm798_vm10, %v1073_v33, %v1086_v61 }
 0x426   :  { %v1080_v52 = vsel %vm798_vm10, %v1041_v51, %v1079_v30  ;;  %v1093_v36 = vsel %vm809_vm2, %v1087_v5, 0.0 }
 0x427   :  { %v1090_v56 = vsel %vm809_vm2, %v1080_v52, 0.0  ;;  %1094 = vadd.xlane.f32.xlu0 %v1093_v36 }
 0x428   :  { %1091 = vadd.xlane.f32.xlu1 %v1090_v56 }
 0x4b0   :  { %v1095_v41 = vpop.xlane.xlu0 %1094 }
 0x4b1   :  { %v1092_v38 = vpop.xlane.xlu1 %1091 }
 0x4b2   :  { %1627 = vrcp.f32 %v1092_v38 }
 0x4b3   :  { %1629 = vrcp.f32 %v1095_v41 }
 0x4bf   :  { %v1628_v35 = vpop.eup %1627 }
 0x4c0   :  { %v1630_v10 = vpop.eup %1629  ;;  %v1107_v42 = vrot.slane %v1628_v35, %v1736_v19  ;;  %v1103_v37 = vrot.slane %v1628_v35, %v1713_v9  ;;  %v1111_v45 = vrot.slane %v1628_v35, %v1723_v12 }
 0x4c1   :  { %v1139_v44 = vrot.slane %v1630_v10, %v1736_v19  ;;  %v1135_v39 = vrot.slane %v1630_v10, %v1713_v9  ;;  %v1143_v40 = vrot.slane %v1630_v10, %v1723_v12  ;;  %v1147_v19 = vrot.slane %v1630_v10, %v1728_v14 }
 0x4c2   :  { %v1181_v43 = vmul.f32 %v2012_v58, %v1107_v42  ;;  %v1180_v28 = vmul.f32 %v2007_v46, %v1103_v37  ;;  %v1182_v46 = vmul.f32 %v2035_v3, %v1111_v45  ;;  %v1115_v9 = vrot.slane %v1628_v35, %v1728_v14 }
 0x4c3   :  { %v1189_v47 = vmul.f32 %v2030_v2, %v1139_v44  ;;  %v1188_v48 = vmul.f32 %v2025_v60, %v1135_v39  ;;  %v1190_v58 = vmul.f32 %v2038_v0, %v1143_v40  ;;  %v1191_v2 = vmul.f32 %v2044_v15, %v1147_v19 }
 0x4c4   :  { %1208 = vperm.xlu1 %1594, %v1181_v43   ;;  %1205 = vperm.xlu0 %1593, %v1180_v28   ;;  %v1183_v60 = vmul.f32 %v2042_v13, %v1115_v9  ;;  %v1151_v6 = vrot.slane %v1630_v10, %v1739_v20  ;;  %v1119_v12 = vrot.slane %v1628_v35, %v1739_v20 }
 0x4c5   :  { %v1155_v50 = vrot.slane %v1630_v10, %v1746_v29  ;;  %v1123_v14 = vrot.slane %v1628_v35, %v1746_v29  ;;  %v1159_v27 = vrot.slane %v1630_v10, %v1874_v21  ;;  %v1127_v20 = vrot.slane %v1628_v35, %v1874_v21 }
 0x4c6   :  { %v1192_v0 = vmul.f32 %v2050_v22, %v1151_v6  ;;  %v1184_v3 = vmul.f32 %v2048_v53, %v1119_v12  ;;  %v1163_v54 = vrot.slane %v1630_v10, %v1869_v16  ;;  %v1131_v29 = vrot.slane %v1628_v35, %v1869_v16 }
 0x4c7   :  { %v1193_v15 = vmul.f32 %v2056_v17, %v1155_v50  ;;  %v1185_v13 = vmul.f32 %v2054_v26, %v1123_v14  ;;  %v1194_v22 = vmul.f32 %v2062_v7, %v1159_v27  ;;  %v1186_v53 = vmul.f32 %v2060_v23, %v1127_v20 }
 0x4c8   :  { %1362 = vperm.xlu0 %1593, %v1189_v47   ;;  %1359 = vperm.xlu1 %1594, %v1188_v48   ;;  %v1195_v17 = vmul.f32 %v2068_v24, %v1163_v54  ;;  %v1187_v26 = vmul.f32 %v2066_v8, %v1131_v29 }
 0x4cc   :  { %1365 = vperm.xlu0 %1593, %v1190_v58   ;;  %1211 = vperm.xlu1 %1594, %v1182_v46  }
 0x4d0   :  { %1368 = vperm.xlu0 %1593, %v1191_v2   ;;  %1214 = vperm.xlu1 %1594, %v1183_v60   ;;  %v1648_v60 = vld [vmem:[%s2194_s0 + $0x18] sm:$0xff] }
 0x4d4   :  { %1371 = vperm.xlu0 %1593, %v1192_v0   ;;  %1217 = vperm.xlu1 %1594, %v1184_v3  }
 0x4d8   :  { %1374 = vperm.xlu0 %1593, %v1193_v15   ;;  %1220 = vperm.xlu1 %1594, %v1185_v13  }
 0x4dc   :  { %1377 = vperm.xlu0 %1593, %v1194_v22   ;;  %1223 = vperm.xlu1 %1594, %v1186_v53  }
 0x4e0   :  { %1380 = vperm.xlu0 %1593, %v1195_v17   ;;  %1226 = vperm.xlu1 %1594, %v1187_v26  }
 0x53f   :  { %v1209_v34 = vpop.permute.xlu1 %1208  ;;  %v1206_v21 = vpop.permute.xlu0 %1205 }
 0x540   :  { %v1235_v4 = vrot.slane %v1209_v34, %v1938_v1  ;;  %v1231_v24 = vrot.slane %v1206_v21, %v1938_v1 }
 0x542   :  { %v1260_v56 = vsel %vm786_vm4, %v1235_v4, %v1231_v24 }
 0x543   :  { %v1360_v57 = vpop.permute.xlu1 %1359  ;;  %v1363_v59 = vpop.permute.xlu0 %1362 }
 0x544   :  { %v1385_v8 = vrot.slane %v1360_v57, %v1938_v1  ;;  %v1389_v11 = vrot.slane %v1363_v59, %v1938_v1 }
 0x546   :  { %v1414_v5 = vsel %vm786_vm4, %v1389_v11, %v1385_v8 }
 0x547   :  { %v1212_v31 = vpop.permute.xlu1 %1211  ;;  %v1366_v7 = vpop.permute.xlu0 %1365 }
 0x548   :  { %v1239_v49 = vrot.slane %v1212_v31, %v1938_v1  ;;  %v1393_v51 = vrot.slane %v1366_v7, %v1938_v1 }
 0x54a   :  { %v1261_v41 = vsel %vm788_vm5, %v1239_v49, %v1260_v56  ;;  %v1415_v35 = vsel %vm788_vm5, %v1393_v51, %v1414_v5 }
 0x54b   :  { %v1215_v62 = vpop.permute.xlu1 %1214  ;;  %v1369_v23 = vpop.permute.xlu0 %1368 }
 0x54c   :  { %v1243_v25 = vrot.slane %v1215_v62, %v1938_v1  ;;  %v1397_v32 = vrot.slane %v1369_v23, %v1938_v1 }
 0x54e   :  { %v1262_v37 = vsel %vm790_vm6, %v1243_v25, %v1261_v41  ;;  %v1416_v43 = vsel %vm790_vm6, %v1397_v32, %v1415_v35 }
 0x54f   :  { %v1218_v63 = vpop.permute.xlu1 %1217  ;;  %v1372_v55 = vpop.permute.xlu0 %1371 }
 0x550   :  { %v1247_v33 = vrot.slane %v1218_v63, %v1938_v1  ;;  %v1401_v30 = vrot.slane %v1372_v55, %v1938_v1 }
 0x552   :  { %v1263_v28 = vsel %vm792_vm7, %v1247_v33, %v1262_v37  ;;  %v1417_v44 = vsel %vm792_vm7, %v1401_v30, %v1416_v43 }
 0x553   :  { %v1221_v18 = vpop.permute.xlu1 %1220  ;;  %v1375_v16 = vpop.permute.xlu0 %1374 }
 0x554   :  { %v1251_v36 = vrot.slane %v1221_v18, %v1938_v1  ;;  %v1405_v38 = vrot.slane %v1375_v16, %v1938_v1 }
 0x556   :  { %v1264_v48 = vsel %vm794_vm8, %v1251_v36, %v1263_v28  ;;  %v1418_v40 = vsel %vm794_vm8, %v1405_v38, %v1417_v44 }
 0x557   :  { %v1224_v52 = vpop.permute.xlu1 %1223  ;;  %v1378_v61 = vpop.permute.xlu0 %1377 }
 0x558   :  { %v1255_v10 = vrot.slane %v1224_v52, %v1938_v1  ;;  %v1409_v42 = vrot.slane %v1378_v61, %v1938_v1 }
 0x55a   :  { %v1265_v46 = vsel %vm796_vm9, %v1255_v10, %v1264_v48  ;;  %v1419_v19 = vsel %vm796_vm9, %v1409_v42, %v1418_v40 }
 0x55b   :  { %v1227_v39 = vpop.permute.xlu1 %1226  ;;  %v1381_v47 = vpop.permute.xlu0 %1380 }
 0x55c   :  { %v1259_v45 = vrot.slane %v1227_v39, %v1938_v1  ;;  %v1413_v58 = vrot.slane %v1381_v47, %v1938_v1  ;;  %v1647_v1 = vld [vmem:[%s2194_s0 + $0x8] sm:$0xff] }
 0x55e   :  { %v1266_v9 = vsel %vm798_vm10, %v1259_v45, %v1265_v46  ;;  %v1420_v2 = vsel %vm798_vm10, %v1413_v58, %v1419_v19 }
 0x55f   :  { %1577 = vmatprep.subr.msk.mxu0 %vm809_vm2, %v1266_v9  ;;  %1582 = vmatprep.subr.msk.mxu1 %vm809_vm2, %v1420_v2 }
 0x560   :  { %1578 = vmatpush3.xpose.msk.msra.mxu0 %vm809_vm2, %v1266_v9  ;;  %1583 = vmatpush3.xpose.msk.msra.mxu1 %vm809_vm2, %v1420_v2 }
 0x563   :  { %1580 = vmatmul.mubr.msk.f32.vlgmr.msra.gmra.mxu0 %vm809_vm2, %v1647_v1  ;;  %1585 = vmatmul.mubr.msk.f32.vlgmr.msra.gmra.mxu1 %vm809_vm2, %v1648_v60 }
 0x623   :  { %v1581_v6 = vpop.f32.mrf.mxu0  ;;  %v1586_v12 = vpop.f32.mrf.mxu1 }
 0x624   :  { %v1548_v0 = vmul.f32 -1.442695, %v1581_v6  ;;  %v1550_v3 = vmul.f32 -1.442695, %v1586_v12 }
 0x625   :  { %v1341_v50 = vpop.f32.mrf.mxu0  ;;  %v1495_v14 = vpop.f32.mrf.mxu1 }
 0x626   :  { %1631 = vpow2.f32 %v1548_v0  ;;  %v1547_v15 = vmul.f32 -1.442695, %v1341_v50  ;;  %v1549_v13 = vmul.f32 -1.442695, %v1495_v14 }
 0x627   :  { %1633 = vpow2.f32 %v1550_v3 }
 0x628   :  { %1635 = vpow2.f32 %v1547_v15 }
 0x629   :  { %1637 = vpow2.f32 %v1549_v13 }
 0x633   :  { %v1632_v27 = vpop.eup %1631 }
 0x634   :  { %v1634_v20 = vpop.eup %1633  ;;  %v1517_v22 = vadd.f32 1.0, %v1632_v27 }
 0x635   :  { %v1636_v53 = vpop.eup %1635  ;;  %v1519_v54 = vadd.f32 1.0, %v1634_v20 }
 0x636   :  { %v1638_v29 = vpop.eup %1637  ;;  %1639 = vrcp.f32 %v1517_v22  ;;  %v1516_v17 = vadd.f32 1.0, %v1636_v53 }
 0x637   :  { %1641 = vrcp.f32 %v1519_v54  ;;  %v1518_v26 = vadd.f32 1.0, %v1638_v29 }
 0x638   :  { %1643 = vrcp.f32 %v1516_v17 }
 0x639   :  { %1645 = vrcp.f32 %v1518_v26 }
 0x643   :  { %v1640_v34 = vpop.eup %1639 }
 0x644   :  { %v1642_v21 = vpop.eup %1641  ;;  %1530 = vst.msk [vmem:[%s2199_s5 + $0x8] sm:$0xff] %vm809_vm2, %v1640_v34 }
 0x645   :  { %v1644_v57 = vpop.eup %1643  ;;  %1532 = vst.msk [vmem:[%s2199_s5 + $0x18] sm:$0xff] %vm809_vm2, %v1642_v21 }
 0x646   :  { %v1646_v59 = vpop.eup %1645  ;;  %1529 = vst.msk [vmem:[%s2199_s5] sm:$0xff] %vm809_vm2, %v1644_v57 }
 0x647   :  { %1531 = vst.msk [vmem:[%s2199_s5 + $0x10] sm:$0xff] %vm809_vm2, %v1646_v59 }

</bundles_post_ra>
